<compile_context>
chip_gen: v5e
topology: v5e:2x2
jax: 0.10.0
libtpu: 0.0.40
codegen_flags: <defaults>
</compile_context>

<pallas_src>
import functools

import jax
import jax.numpy as jnp
from jax.experimental import pallas as pl
from jax.experimental.pallas import tpu as pltpu

EPS = 1e-5


def _round_up(x, m):
    return ((x + m - 1) // m) * m


# ----------------------------------------------------------------------------
# In-kernel conv3x3(same) + bias + ReLU for one image, (C, H*W) lane layout.
# ----------------------------------------------------------------------------
def _conv_relu_img(x3_ref, w_ref, b_ref, mask_ref, b, *, hw):
    """x3_ref: (bt, 3*c_in, L3) bf16  -- dy-replicated, lane-shifted flat input
    w_ref : (3, c_out, 3*c_in) bf16   -- taps grouped by dx, dy folded into k
    b_ref : (c_out, 1) f32; mask_ref: (2, hw) f32 row-wrap masks.
    Returns (c_out, hw) f32."""
    m_left = mask_ref[0:1, :]     # zero where output col == 0      (dx == 0)
    m_right = mask_ref[1:2, :]    # zero where output col == w - 1  (dx == 2)
    # Three fused matmuls, contraction depth 3*c_in, bf16 operands, f32 acc.
    p0 = jnp.dot(w_ref[0], x3_ref[b, :, pl.ds(0, hw)],
                 preferred_element_type=jnp.float32)
    p1 = jnp.dot(w_ref[1], x3_ref[b, :, pl.ds(1, hw)],
                 preferred_element_type=jnp.float32)
    p2 = jnp.dot(w_ref[2], x3_ref[b, :, pl.ds(2, hw)],
                 preferred_element_type=jnp.float32)
    # Output-side wrap masking (commutes with the matmul along the lane axis).
    y = p0 * m_left + p1 + p2 * m_right + b_ref[...]
    return jnp.maximum(y, 0.0)


# ----------------------------------------------------------------------------
# Pass 1: per-image sum and CENTERED sum of squares of relu(conv + bias).
# ----------------------------------------------------------------------------
def _stats_kernel(x3_ref, w_ref, b_ref, mask_ref, stat_ref, *, hw, bt):
    inv_hw = 1.0 / hw
    for b in range(bt):                              # static unrolled loop
        y = _conv_relu_img(x3_ref, w_ref, b_ref, mask_ref, b, hw=hw)
        s = jnp.sum(y, axis=-1, keepdims=True)       # (c_out, 1)
        d = y - s * inv_hw                           # center with own mean
        m2 = jnp.sum(d * d, axis=-1, keepdims=True)  # (c_out, 1)
        stat_ref[b, :, 0:1] = s
        stat_ref[b, :, 1:2] = m2


# ----------------------------------------------------------------------------
# Pass 2: recompute conv+ReLU and apply batch norm (y * scale + shift).
# ----------------------------------------------------------------------------
def _apply_kernel(x3_ref, w_ref, b_ref, mask_ref, scale_ref, shift_ref, o_ref,
                  *, hw, bt):
    for b in range(bt):
        y = _conv_relu_img(x3_ref, w_ref, b_ref, mask_ref, b, hw=hw)
        o_ref[b] = y * scale_ref[...] + shift_ref[...]


# ----------------------------------------------------------------------------
# JAX-side preparation (cheap, one-off).
# ----------------------------------------------------------------------------
def _prepare_inputs(x, weight):
    """dy-replicated flat-padded input (bf16), dx-grouped weights (bf16),
    and the left/right column wrap masks (f32)."""
    n, c_in, h, w = x.shape
    c_out = weight.shape[0]
    hw = h * w
    pad_l = w + 1                       # top-row conv padding in flat layout
    L3 = _round_up(hw + 2, 128)         # per-dy-group flat length (lane axis)
    total = 2 * w + L3                  # full padded flat stream
    pad_r = total - pad_l - hw
    xp = jnp.pad(x.reshape(n, c_in, hw), ((0, 0), (0, 0), (pad_l, pad_r)))
    # Group dy is the padded stream shifted by dy*w, so the in-kernel slice at
    # lane offset dx reads original pixel (row+dy-1, col+dx-1) for output lane
    # f = row*w + col (wrap columns handled by the masks below).
    x3 = jnp.concatenate([xp[:, :, dy * w: dy * w + L3] for dy in range(3)],
                         axis=1)                         # (n, 3*c_in, L3)
    x3 = x3.astype(jnp.bfloat16)
    # Weights grouped by dx, dy folded into the contraction:
    #   w_grp[dx, o, dy*c_in + c] = weight[o, c, dy, dx]
    w_grp = jnp.transpose(weight, (3, 0, 2, 1)).reshape(3, c_out, 3 * c_in)
    w_grp = w_grp.astype(jnp.bfloat16)
    # Output-column wrap masks (flat layout has no W padding).
    col = jnp.arange(hw, dtype=jnp.int32) % w
    masks = jnp.stack([(col != 0).astype(jnp.float32),
                       (col != (w - 1)).astype(jnp.float32)], axis=0)  # (2,hw)
    return x3, w_grp, masks, L3


def _pick_bt(n, c_in, c_out, hw, L3, max_bt=8, budget_bytes=8 << 20):
    """Images per grid step: amortize per-step overhead, stay inside VMEM."""
    per_img = 3 * c_in * L3 * 2 + 2 * c_out * hw * 4   # x3 bf16 + y/out f32
    bt = 1
    for d in range(1, min(n, max_bt) + 1):
        if n % d == 0 and 2 * d * per_img <= budget_bytes:   # x2 double-buffer
            bt = d
    return bt


@jax.jit
def conv_block_forward(x, weight, bias, gamma, beta):
    """x: (N, C_in, H, W); weight: (C_out, C_in, 3, 3) -> (N, C_out, H, W)."""
    n, c_in, h, w = x.shape
    c_out = weight.shape[0]
    hw = h * w

    x3, w_grp, masks, L3 = _prepare_inputs(x, weight)
    b_col = bias.reshape(c_out, 1).astype(jnp.float32)

    bt = _pick_bt(n, c_in, c_out, hw, L3)
    grid = (n // bt,)
    statics = dict(hw=hw, bt=bt)

    x_spec = pl.BlockSpec((bt, 3 * c_in, L3), lambda i: (i, 0, 0))
    w_spec = pl.BlockSpec((3, c_out, 3 * c_in), lambda i: (0, 0, 0))
    col_spec = pl.BlockSpec((c_out, 1), lambda i: (0, 0))   # bias/scale/shift
    m_spec = pl.BlockSpec((2, hw), lambda i: (0, 0))

    cparams = pltpu.CompilerParams(
        dimension_semantics=("parallel",),
        vmem_limit_bytes=64 * 1024 * 1024)

    flops_conv = 2 * 9 * c_in * c_out * hw * n
    x3_bytes = n * 3 * c_in * L3 * 2
    w_bytes = 3 * c_out * 3 * c_in * 2

    # ---- Pass 1: per-image partial statistics (parallel grid over images).
    stats = pl.pallas_call(
        functools.partial(_stats_kernel, **statics),
        out_shape=jax.ShapeDtypeStruct((n, c_out, 2), jnp.float32),
        grid_spec=pltpu.PrefetchScalarGridSpec(
            num_scalar_prefetch=0,
            grid=grid,
            in_specs=[x_spec, w_spec, col_spec, m_spec],
            out_specs=pl.BlockSpec((bt, c_out, 2), lambda i: (i, 0, 0)),
        ),
        compiler_params=cparams,
        cost_estimate=pl.CostEstimate(
            flops=flops_conv + 6 * c_out * hw * n, transcendentals=0,
            bytes_accessed=x3_bytes + w_bytes + n * c_out * 2 * 4),
    )(x3, w_grp, b_col, masks)

    # Training-mode BatchNorm2d statistics (biased variance), combined from
    # per-image (sum, centered M2) with the Chan parallel formula -- avoids
    # E[y^2] - E[y]^2 cancellation.
    total = n * hw
    s = stats[:, :, 0]                                   # (n, c_out)
    m2 = stats[:, :, 1]
    mean = jnp.sum(s, axis=0) / total                    # (c_out,)
    mu_i = s / hw
    m2_tot = (jnp.sum(m2, axis=0)
              + hw * jnp.sum(jnp.square(mu_i - mean[None, :]), axis=0))
    var = jnp.maximum(m2_tot / total, 0.0)
    scale = gamma * jax.lax.rsqrt(var + EPS)
    shift = beta - mean * scale

    # ---- Pass 2: recompute conv+ReLU, apply BN; output written exactly once
    #      in lane-dense (N, C_out, H*W) layout (reshape to NCHW is free).
    out = pl.pallas_call(
        functools.partial(_apply_kernel, **statics),
        out_shape=jax.ShapeDtypeStruct((n, c_out, hw), jnp.float32),
        grid_spec=pltpu.PrefetchScalarGridSpec(
            num_scalar_prefetch=0,
            grid=grid,
            in_specs=[x_spec, w_spec, col_spec, m_spec, col_spec, col_spec],
            out_specs=pl.BlockSpec((bt, c_out, hw), lambda i: (i, 0, 0)),
        ),
        compiler_params=cparams,
        cost_estimate=pl.CostEstimate(
            flops=flops_conv + 4 * c_out * hw * n, transcendentals=0,
            bytes_accessed=x3_bytes + w_bytes + n * c_out * hw * 4),
    )(x3, w_grp, b_col, masks,
      scale.reshape(c_out, 1), shift.reshape(c_out, 1))

    return out.reshape(n, c_out, h, w)


# ----------------------------------------------------------------------------
# Pure-JAX reference (matmul_dtype controls only the conv operand precision).
# ----------------------------------------------------------------------------
def _reference(x, weight, bias, gamma, beta, *, matmul_dtype=jnp.float32):
    y = jax.lax.conv_general_dilated(
        x.astype(matmul_dtype), weight.astype(matmul_dtype),
        window_strides=(1, 1), padding="SAME",
        dimension_numbers=("NCHW", "OIHW", "NCHW"),
        preferred_element_type=jnp.float32)
    y = jnp.maximum(y + bias.reshape(1, -1, 1, 1), 0.0)
    mean = jnp.mean(y, axis=(0, 2, 3), keepdims=True)
    var = jnp.mean((y - mean) ** 2, axis=(0, 2, 3), keepdims=True)
    yhat = (y - mean) * jax.lax.rsqrt(var + EPS)
    return yhat * gamma.reshape(1, -1, 1, 1) + beta.reshape(1, -1, 1, 1)


if __name__ == "__main__":
    N, C_IN, C_OUT, H, W = 2, 4, 8, 16, 16

    key = jax.random.PRNGKey(0)
    kx, kw, kb, kg, kbeta = jax.random.split(key, 5)

    x = jax.random.normal(kx, (N, C_IN, H, W), dtype=jnp.float32)
    weight = jax.random.normal(kw, (C_OUT, C_IN, 3, 3), dtype=jnp.float32) * 0.1
    bias = jax.random.normal(kb, (C_OUT,), dtype=jnp.float32) * 0.1
    gamma = 1.0 + 0.1 * jax.random.normal(kg, (C_OUT,), dtype=jnp.float32)
    beta = 0.1 * jax.random.normal(kbeta, (C_OUT,), dtype=jnp.float32)

    out = conv_block_forward(x, weight, bias, gamma, beta)
    out = jax.block_until_ready(out)
    assert out.shape == (N, C_OUT, H, W)

    # Strict check against a reference that uses the same bf16 matmul operands
    # (isolates kernel logic from the deliberate bf16 precision tradeoff).
    ref_bf16 = _reference(x, weight, bias, gamma, beta,
                          matmul_dtype=jnp.bfloat16)
    err_bf16 = float(jnp.max(jnp.abs(out - ref_bf16)))
    assert jnp.allclose(out, ref_bf16, atol=5e-3, rtol=5e-3), err_bf16

    # Sanity check against the full-f32 reference (bf16 MXU operands => looser
    # tolerance; accumulation / ReLU / BN math are f32 in the kernel).
    ref_f32 = _reference(x, weight, bias, gamma, beta)
    err_f32 = float(jnp.max(jnp.abs(out - ref_f32)))
    assert jnp.allclose(out, ref_f32, atol=5e-2, rtol=5e-2), err_f32

    print("KERNEL_OK")
</pallas_src>

<mosaic_0001>
module attributes {stable_mosaic.version = 11 : i64} {
  func.func @_stats_kernel(%arg0: i32, %arg1: memref<2x12x384xbf16, #tpu.memory_space<vmem>>, %arg2: memref<3x8x12xbf16, #tpu.memory_space<vmem>>, %arg3: memref<8x1xf32, #tpu.memory_space<vmem>>, %arg4: memref<2x256xf32, #tpu.memory_space<vmem>>, %arg5: memref<2x8x2xf32, #tpu.memory_space<vmem>>) attributes {dimension_semantics = [#tpu.dimension_semantics<parallel>], iteration_bounds = array<i64: 1>, scalar_prefetch = 0 : i64, scratch_operands = 0 : i64, tpu.core_type = #tpu.core_type<tc>, window_params = [{transform_indices = @transform_0, window_bounds = array<i64: 2, 12, 384>}, {pipeline_mode = #tpu.pipeline_mode<synchronous>, transform_indices = @transform_1, window_bounds = array<i64: 3, 8, 12>}, {pipeline_mode = #tpu.pipeline_mode<synchronous>, transform_indices = @transform_2, window_bounds = array<i64: 8, 1>}, {pipeline_mode = #tpu.pipeline_mode<synchronous>, transform_indices = @transform_3, window_bounds = array<i64: 2, 256>}, {transform_indices = @transform_4, window_bounds = array<i64: 2, 8, 2>}]} {
    %c0 = arith.constant 0 : index
    %c0_0 = arith.constant 0 : index
    %0 = vector.load %arg4[%c0, %c0_0] : memref<2x256xf32, #tpu.memory_space<vmem>>, vector<1x256xf32>
    %c1 = arith.constant 1 : index
    %c0_1 = arith.constant 0 : index
    %1 = vector.load %arg4[%c1, %c0_1] : memref<2x256xf32, #tpu.memory_space<vmem>>, vector<1x256xf32>
    %c0_2 = arith.constant 0 : index
    %c0_3 = arith.constant 0 : index
    %c0_4 = arith.constant 0 : index
    %2 = vector.load %arg2[%c0_2, %c0_3, %c0_4] : memref<3x8x12xbf16, #tpu.memory_space<vmem>>, vector<1x8x12xbf16>
    %3 = vector.shape_cast %2 : vector<1x8x12xbf16> to vector<8x12xbf16>
    %c0_5 = arith.constant 0 : index
    %c0_6 = arith.constant 0 : index
    %c0_7 = arith.constant 0 : index
    %4 = vector.load %arg1[%c0_5, %c0_6, %c0_7] : memref<2x12x384xbf16, #tpu.memory_space<vmem>>, vector<1x12x256xbf16>
    %5 = vector.shape_cast %4 : vector<1x12x256xbf16> to vector<12x256xbf16>
    %cst = arith.constant dense<0.000000e+00> : vector<8x256xf32>
    %6 = tpu.matmul %3, %5, %cst {dimension_numbers = #tpu.dot_dimension_numbers<[1], [0], [0], [1], [0, 0, 1, 1], [], []>} : vector<8x12xbf16>, vector<12x256xbf16>, vector<8x256xf32> -> vector<8x256xf32>
    %c1_8 = arith.constant 1 : index
    %c0_9 = arith.constant 0 : index
    %c0_10 = arith.constant 0 : index
    %7 = vector.load %arg2[%c1_8, %c0_9, %c0_10] : memref<3x8x12xbf16, #tpu.memory_space<vmem>>, vector<1x8x12xbf16>
    %8 = vector.shape_cast %7 : vector<1x8x12xbf16> to vector<8x12xbf16>
    %c0_11 = arith.constant 0 : index
    %c0_12 = arith.constant 0 : index
    %c1_13 = arith.constant 1 : index
    %9 = vector.load %arg1[%c0_11, %c0_12, %c1_13] : memref<2x12x384xbf16, #tpu.memory_space<vmem>>, vector<1x12x256xbf16>
    %10 = vector.shape_cast %9 : vector<1x12x256xbf16> to vector<12x256xbf16>
    %cst_14 = arith.constant dense<0.000000e+00> : vector<8x256xf32>
    %11 = tpu.matmul %8, %10, %cst_14 {dimension_numbers = #tpu.dot_dimension_numbers<[1], [0], [0], [1], [0, 0, 1, 1], [], []>} : vector<8x12xbf16>, vector<12x256xbf16>, vector<8x256xf32> -> vector<8x256xf32>
    %c2 = arith.constant 2 : index
    %c0_15 = arith.constant 0 : index
    %c0_16 = arith.constant 0 : index
    %12 = vector.load %arg2[%c2, %c0_15, %c0_16] : memref<3x8x12xbf16, #tpu.memory_space<vmem>>, vector<1x8x12xbf16>
    %13 = vector.shape_cast %12 : vector<1x8x12xbf16> to vector<8x12xbf16>
    %c0_17 = arith.constant 0 : index
    %c0_18 = arith.constant 0 : index
    %c2_19 = arith.constant 2 : index
    %14 = vector.load %arg1[%c0_17, %c0_18, %c2_19] : memref<2x12x384xbf16, #tpu.memory_space<vmem>>, vector<1x12x256xbf16>
    %15 = vector.shape_cast %14 : vector<1x12x256xbf16> to vector<12x256xbf16>
    %cst_20 = arith.constant dense<0.000000e+00> : vector<8x256xf32>
    %16 = tpu.matmul %13, %15, %cst_20 {dimension_numbers = #tpu.dot_dimension_numbers<[1], [0], [0], [1], [0, 0, 1, 1], [], []>} : vector<8x12xbf16>, vector<12x256xbf16>, vector<8x256xf32> -> vector<8x256xf32>
    %17 = vector.broadcast %0 : vector<1x256xf32> to vector<8x256xf32>
    %18 = arith.mulf %6, %17 : vector<8x256xf32>
    %19 = arith.addf %18, %11 : vector<8x256xf32>
    %20 = vector.broadcast %1 : vector<1x256xf32> to vector<8x256xf32>
    %21 = arith.mulf %16, %20 : vector<8x256xf32>
    %22 = arith.addf %19, %21 : vector<8x256xf32>
    %c0_21 = arith.constant 0 : index
    %c0_22 = arith.constant 0 : index
    %23 = vector.load %arg3[%c0_21, %c0_22] : memref<8x1xf32, #tpu.memory_space<vmem>>, vector<8x1xf32>
    %24 = vector.broadcast %23 : vector<8x1xf32> to vector<8x256xf32>
    %25 = arith.addf %22, %24 : vector<8x256xf32>
    %cst_23 = arith.constant 0.000000e+00 : f32
    %26 = vector.broadcast %cst_23 : f32 to vector<8x256xf32>
    %27 = arith.maximumf %25, %26 : vector<8x256xf32>
    %cst_24 = arith.constant dense<0.000000e+00> : vector<8xf32>
    %28 = vector.multi_reduction <add>, %27, %cst_24 [1] : vector<8x256xf32> to vector<8xf32>
    %29 = vector.shape_cast %28 : vector<8xf32> to vector<8x1xf32>
    %cst_25 = arith.constant 3.906250e-03 : f32
    %30 = vector.broadcast %cst_25 : f32 to vector<8x1xf32>
    %31 = arith.mulf %29, %30 : vector<8x1xf32>
    %32 = vector.broadcast %31 : vector<8x1xf32> to vector<8x256xf32>
    %33 = arith.subf %27, %32 : vector<8x256xf32>
    %34 = arith.mulf %33, %33 : vector<8x256xf32>
    %cst_26 = arith.constant dense<0.000000e+00> : vector<8xf32>
    %35 = vector.multi_reduction <add>, %34, %cst_26 [1] : vector<8x256xf32> to vector<8xf32>
    %36 = vector.shape_cast %35 : vector<8xf32> to vector<8x1xf32>
    %c0_27 = arith.constant 0 : index
    %c0_28 = arith.constant 0 : index
    %c0_29 = arith.constant 0 : index
    %37 = vector.load %arg5[%c0_27, %c0_28, %c0_29] : memref<2x8x2xf32, #tpu.memory_space<vmem>>, vector<1x8x1xf32>
    %38 = vector.shape_cast %37 : vector<1x8x1xf32> to vector<8x1xf32>
    %39 = vector.shape_cast %29 : vector<8x1xf32> to vector<1x8x1xf32>
    tpu.vector_store %arg5[%c0_27, %c0_28, %c0_29], %39 {strides = array<i32>} : memref<2x8x2xf32, #tpu.memory_space<vmem>>, vector<1x8x1xf32>,
    %c0_30 = arith.constant 0 : index
    %c0_31 = arith.constant 0 : index
    %c1_32 = arith.constant 1 : index
    %40 = vector.load %arg5[%c0_30, %c0_31, %c1_32] : memref<2x8x2xf32, #tpu.memory_space<vmem>>, vector<1x8x1xf32>
    %41 = vector.shape_cast %40 : vector<1x8x1xf32> to vector<8x1xf32>
    %42 = vector.shape_cast %36 : vector<8x1xf32> to vector<1x8x1xf32>
    tpu.vector_store %arg5[%c0_30, %c0_31, %c1_32], %42 {strides = array<i32>} : memref<2x8x2xf32, #tpu.memory_space<vmem>>, vector<1x8x1xf32>,
    %c0_33 = arith.constant 0 : index
    %c0_34 = arith.constant 0 : index
    %43 = vector.load %arg4[%c0_33, %c0_34] : memref<2x256xf32, #tpu.memory_space<vmem>>, vector<1x256xf32>
    %c1_35 = arith.constant 1 : index
    %c0_36 = arith.constant 0 : index
    %44 = vector.load %arg4[%c1_35, %c0_36] : memref<2x256xf32, #tpu.memory_space<vmem>>, vector<1x256xf32>
    %c0_37 = arith.constant 0 : index
    %c0_38 = arith.constant 0 : index
    %c0_39 = arith.constant 0 : index
    %45 = vector.load %arg2[%c0_37, %c0_38, %c0_39] : memref<3x8x12xbf16, #tpu.memory_space<vmem>>, vector<1x8x12xbf16>
    %46 = vector.shape_cast %45 : vector<1x8x12xbf16> to vector<8x12xbf16>
    %c1_40 = arith.constant 1 : index
    %c0_41 = arith.constant 0 : index
    %c0_42 = arith.constant 0 : index
    %47 = vector.load %arg1[%c1_40, %c0_41, %c0_42] : memref<2x12x384xbf16, #tpu.memory_space<vmem>>, vector<1x12x256xbf16>
    %48 = vector.shape_cast %47 : vector<1x12x256xbf16> to vector<12x256xbf16>
    %cst_43 = arith.constant dense<0.000000e+00> : vector<8x256xf32>
    %49 = tpu.matmul %46, %48, %cst_43 {dimension_numbers = #tpu.dot_dimension_numbers<[1], [0], [0], [1], [0, 0, 1, 1], [], []>} : vector<8x12xbf16>, vector<12x256xbf16>, vector<8x256xf32> -> vector<8x256xf32>
    %c1_44 = arith.constant 1 : index
    %c0_45 = arith.constant 0 : index
    %c0_46 = arith.constant 0 : index
    %50 = vector.load %arg2[%c1_44, %c0_45, %c0_46] : memref<3x8x12xbf16, #tpu.memory_space<vmem>>, vector<1x8x12xbf16>
    %51 = vector.shape_cast %50 : vector<1x8x12xbf16> to vector<8x12xbf16>
    %c1_47 = arith.constant 1 : index
    %c0_48 = arith.constant 0 : index
    %c1_49 = arith.constant 1 : index
    %52 = vector.load %arg1[%c1_47, %c0_48, %c1_49] : memref<2x12x384xbf16, #tpu.memory_space<vmem>>, vector<1x12x256xbf16>
    %53 = vector.shape_cast %52 : vector<1x12x256xbf16> to vector<12x256xbf16>
    %cst_50 = arith.constant dense<0.000000e+00> : vector<8x256xf32>
    %54 = tpu.matmul %51, %53, %cst_50 {dimension_numbers = #tpu.dot_dimension_numbers<[1], [0], [0], [1], [0, 0, 1, 1], [], []>} : vector<8x12xbf16>, vector<12x256xbf16>, vector<8x256xf32> -> vector<8x256xf32>
    %c2_51 = arith.constant 2 : index
    %c0_52 = arith.constant 0 : index
    %c0_53 = arith.constant 0 : index
    %55 = vector.load %arg2[%c2_51, %c0_52, %c0_53] : memref<3x8x12xbf16, #tpu.memory_space<vmem>>, vector<1x8x12xbf16>
    %56 = vector.shape_cast %55 : vector<1x8x12xbf16> to vector<8x12xbf16>
    %c1_54 = arith.constant 1 : index
    %c0_55 = arith.constant 0 : index
    %c2_56 = arith.constant 2 : index
    %57 = vector.load %arg1[%c1_54, %c0_55, %c2_56] : memref<2x12x384xbf16, #tpu.memory_space<vmem>>, vector<1x12x256xbf16>
    %58 = vector.shape_cast %57 : vector<1x12x256xbf16> to vector<12x256xbf16>
    %cst_57 = arith.constant dense<0.000000e+00> : vector<8x256xf32>
    %59 = tpu.matmul %56, %58, %cst_57 {dimension_numbers = #tpu.dot_dimension_numbers<[1], [0], [0], [1], [0, 0, 1, 1], [], []>} : vector<8x12xbf16>, vector<12x256xbf16>, vector<8x256xf32> -> vector<8x256xf32>
    %60 = vector.broadcast %43 : vector<1x256xf32> to vector<8x256xf32>
    %61 = arith.mulf %49, %60 : vector<8x256xf32>
    %62 = arith.addf %61, %54 : vector<8x256xf32>
    %63 = vector.broadcast %44 : vector<1x256xf32> to vector<8x256xf32>
    %64 = arith.mulf %59, %63 : vector<8x256xf32>
    %65 = arith.addf %62, %64 : vector<8x256xf32>
    %c0_58 = arith.constant 0 : index
    %c0_59 = arith.constant 0 : index
    %66 = vector.load %arg3[%c0_58, %c0_59] : memref<8x1xf32, #tpu.memory_space<vmem>>, vector<8x1xf32>
    %67 = vector.broadcast %66 : vector<8x1xf32> to vector<8x256xf32>
    %68 = arith.addf %65, %67 : vector<8x256xf32>
    %cst_60 = arith.constant 0.000000e+00 : f32
    %69 = vector.broadcast %cst_60 : f32 to vector<8x256xf32>
    %70 = arith.maximumf %68, %69 : vector<8x256xf32>
    %cst_61 = arith.constant dense<0.000000e+00> : vector<8xf32>
    %71 = vector.multi_reduction <add>, %70, %cst_61 [1] : vector<8x256xf32> to vector<8xf32>
    %72 = vector.shape_cast %71 : vector<8xf32> to vector<8x1xf32>
    %cst_62 = arith.constant 3.906250e-03 : f32
    %73 = vector.broadcast %cst_62 : f32 to vector<8x1xf32>
    %74 = arith.mulf %72, %73 : vector<8x1xf32>
    %75 = vector.broadcast %74 : vector<8x1xf32> to vector<8x256xf32>
    %76 = arith.subf %70, %75 : vector<8x256xf32>
    %77 = arith.mulf %76, %76 : vector<8x256xf32>
    %cst_63 = arith.constant dense<0.000000e+00> : vector<8xf32>
    %78 = vector.multi_reduction <add>, %77, %cst_63 [1] : vector<8x256xf32> to vector<8xf32>
    %79 = vector.shape_cast %78 : vector<8xf32> to vector<8x1xf32>
    %c1_64 = arith.constant 1 : index
    %c0_65 = arith.constant 0 : index
    %c0_66 = arith.constant 0 : index
    %80 = vector.load %arg5[%c1_64, %c0_65, %c0_66] : memref<2x8x2xf32, #tpu.memory_space<vmem>>, vector<1x8x1xf32>
    %81 = vector.shape_cast %80 : vector<1x8x1xf32> to vector<8x1xf32>
    %82 = vector.shape_cast %72 : vector<8x1xf32> to vector<1x8x1xf32>
    tpu.vector_store %arg5[%c1_64, %c0_65, %c0_66], %82 {strides = array<i32>} : memref<2x8x2xf32, #tpu.memory_space<vmem>>, vector<1x8x1xf32>,
    %c1_67 = arith.constant 1 : index
    %c0_68 = arith.constant 0 : index
    %c1_69 = arith.constant 1 : index
    %83 = vector.load %arg5[%c1_67, %c0_68, %c1_69] : memref<2x8x2xf32, #tpu.memory_space<vmem>>, vector<1x8x1xf32>
    %84 = vector.shape_cast %83 : vector<1x8x1xf32> to vector<8x1xf32>
    %85 = vector.shape_cast %79 : vector<8x1xf32> to vector<1x8x1xf32>
    tpu.vector_store %arg5[%c1_67, %c0_68, %c1_69], %85 {strides = array<i32>} : memref<2x8x2xf32, #tpu.memory_space<vmem>>, vector<1x8x1xf32>,
    return
  }
  func.func @transform_0(%arg0: i32) -> (i32, i32, i32) {
    %c0_i32 = arith.constant 0 : i32
    %c0_i32_0 = arith.constant 0 : i32
    %c0_i32_1 = arith.constant 0 : i32
    return %arg0, %c0_i32, %c0_i32_0 : i32, i32, i32
  }
  func.func @transform_1(%arg0: i32) -> (i32, i32, i32) {
    %c0_i32 = arith.constant 0 : i32
    %c0_i32_0 = arith.constant 0 : i32
    %c0_i32_1 = arith.constant 0 : i32
    %c0_i32_2 = arith.constant 0 : i32
    return %c0_i32, %c0_i32_0, %c0_i32_1 : i32, i32, i32
  }
  func.func @transform_2(%arg0: i32) -> (i32, i32) {
    %c0_i32 = arith.constant 0 : i32
    %c0_i32_0 = arith.constant 0 : i32
    %c0_i32_1 = arith.constant 0 : i32
    return %c0_i32, %c0_i32_0 : i32, i32
  }
  func.func @transform_3(%arg0: i32) -> (i32, i32) {
    %c0_i32 = arith.constant 0 : i32
    %c0_i32_0 = arith.constant 0 : i32
    %c0_i32_1 = arith.constant 0 : i32
    return %c0_i32, %c0_i32_0 : i32, i32
  }
  func.func @transform_4(%arg0: i32) -> (i32, i32, i32) {
    %c0_i32 = arith.constant 0 : i32
    %c0_i32_0 = arith.constant 0 : i32
    %c0_i32_1 = arith.constant 0 : i32
    return %arg0, %c0_i32, %c0_i32_0 : i32, i32, i32
  }
}

module attributes {stable_mosaic.version = 11 : i64} {
  func.func @_apply_kernel(%arg0: i32, %arg1: memref<2x12x384xbf16, #tpu.memory_space<vmem>>, %arg2: memref<3x8x12xbf16, #tpu.memory_space<vmem>>, %arg3: memref<8x1xf32, #tpu.memory_space<vmem>>, %arg4: memref<2x256xf32, #tpu.memory_space<vmem>>, %arg5: memref<8x1xf32, #tpu.memory_space<vmem>>, %arg6: memref<8x1xf32, #tpu.memory_space<vmem>>, %arg7: memref<2x8x256xf32, #tpu.memory_space<vmem>>) attributes {dimension_semantics = [#tpu.dimension_semantics<parallel>], iteration_bounds = array<i64: 1>, scalar_prefetch = 0 : i64, scratch_operands = 0 : i64, tpu.core_type = #tpu.core_type<tc>, window_params = [{transform_indices = @transform_0, window_bounds = array<i64: 2, 12, 384>}, {pipeline_mode = #tpu.pipeline_mode<synchronous>, transform_indices = @transform_1, window_bounds = array<i64: 3, 8, 12>}, {pipeline_mode = #tpu.pipeline_mode<synchronous>, transform_indices = @transform_2, window_bounds = array<i64: 8, 1>}, {pipeline_mode = #tpu.pipeline_mode<synchronous>, transform_indices = @transform_3, window_bounds = array<i64: 2, 256>}, {pipeline_mode = #tpu.pipeline_mode<synchronous>, transform_indices = @transform_4, window_bounds = array<i64: 8, 1>}, {pipeline_mode = #tpu.pipeline_mode<synchronous>, transform_indices = @transform_5, window_bounds = array<i64: 8, 1>}, {transform_indices = @transform_6, window_bounds = array<i64: 2, 8, 256>}]} {
    %c0 = arith.constant 0 : index
    %c0_0 = arith.constant 0 : index
    %0 = vector.load %arg4[%c0, %c0_0] : memref<2x256xf32, #tpu.memory_space<vmem>>, vector<1x256xf32>
    %c1 = arith.constant 1 : index
    %c0_1 = arith.constant 0 : index
    %1 = vector.load %arg4[%c1, %c0_1] : memref<2x256xf32, #tpu.memory_space<vmem>>, vector<1x256xf32>
    %c0_2 = arith.constant 0 : index
    %c0_3 = arith.constant 0 : index
    %c0_4 = arith.constant 0 : index
    %2 = vector.load %arg2[%c0_2, %c0_3, %c0_4] : memref<3x8x12xbf16, #tpu.memory_space<vmem>>, vector<1x8x12xbf16>
    %3 = vector.shape_cast %2 : vector<1x8x12xbf16> to vector<8x12xbf16>
    %c0_5 = arith.constant 0 : index
    %c0_6 = arith.constant 0 : index
    %c0_7 = arith.constant 0 : index
    %4 = vector.load %arg1[%c0_5, %c0_6, %c0_7] : memref<2x12x384xbf16, #tpu.memory_space<vmem>>, vector<1x12x256xbf16>
    %5 = vector.shape_cast %4 : vector<1x12x256xbf16> to vector<12x256xbf16>
    %cst = arith.constant dense<0.000000e+00> : vector<8x256xf32>
    %6 = tpu.matmul %3, %5, %cst {dimension_numbers = #tpu.dot_dimension_numbers<[1], [0], [0], [1], [0, 0, 1, 1], [], []>} : vector<8x12xbf16>, vector<12x256xbf16>, vector<8x256xf32> -> vector<8x256xf32>
    %c1_8 = arith.constant 1 : index
    %c0_9 = arith.constant 0 : index
    %c0_10 = arith.constant 0 : index
    %7 = vector.load %arg2[%c1_8, %c0_9, %c0_10] : memref<3x8x12xbf16, #tpu.memory_space<vmem>>, vector<1x8x12xbf16>
    %8 = vector.shape_cast %7 : vector<1x8x12xbf16> to vector<8x12xbf16>
    %c0_11 = arith.constant 0 : index
    %c0_12 = arith.constant 0 : index
    %c1_13 = arith.constant 1 : index
    %9 = vector.load %arg1[%c0_11, %c0_12, %c1_13] : memref<2x12x384xbf16, #tpu.memory_space<vmem>>, vector<1x12x256xbf16>
    %10 = vector.shape_cast %9 : vector<1x12x256xbf16> to vector<12x256xbf16>
    %cst_14 = arith.constant dense<0.000000e+00> : vector<8x256xf32>
    %11 = tpu.matmul %8, %10, %cst_14 {dimension_numbers = #tpu.dot_dimension_numbers<[1], [0], [0], [1], [0, 0, 1, 1], [], []>} : vector<8x12xbf16>, vector<12x256xbf16>, vector<8x256xf32> -> vector<8x256xf32>
    %c2 = arith.constant 2 : index
    %c0_15 = arith.constant 0 : index
    %c0_16 = arith.constant 0 : index
    %12 = vector.load %arg2[%c2, %c0_15, %c0_16] : memref<3x8x12xbf16, #tpu.memory_space<vmem>>, vector<1x8x12xbf16>
    %13 = vector.shape_cast %12 : vector<1x8x12xbf16> to vector<8x12xbf16>
    %c0_17 = arith.constant 0 : index
    %c0_18 = arith.constant 0 : index
    %c2_19 = arith.constant 2 : index
    %14 = vector.load %arg1[%c0_17, %c0_18, %c2_19] : memref<2x12x384xbf16, #tpu.memory_space<vmem>>, vector<1x12x256xbf16>
    %15 = vector.shape_cast %14 : vector<1x12x256xbf16> to vector<12x256xbf16>
    %cst_20 = arith.constant dense<0.000000e+00> : vector<8x256xf32>
    %16 = tpu.matmul %13, %15, %cst_20 {dimension_numbers = #tpu.dot_dimension_numbers<[1], [0], [0], [1], [0, 0, 1, 1], [], []>} : vector<8x12xbf16>, vector<12x256xbf16>, vector<8x256xf32> -> vector<8x256xf32>
    %17 = vector.broadcast %0 : vector<1x256xf32> to vector<8x256xf32>
    %18 = arith.mulf %6, %17 : vector<8x256xf32>
    %19 = arith.addf %18, %11 : vector<8x256xf32>
    %20 = vector.broadcast %1 : vector<1x256xf32> to vector<8x256xf32>
    %21 = arith.mulf %16, %20 : vector<8x256xf32>
    %22 = arith.addf %19, %21 : vector<8x256xf32>
    %c0_21 = arith.constant 0 : index
    %c0_22 = arith.constant 0 : index
    %23 = vector.load %arg3[%c0_21, %c0_22] : memref<8x1xf32, #tpu.memory_space<vmem>>, vector<8x1xf32>
    %24 = vector.broadcast %23 : vector<8x1xf32> to vector<8x256xf32>
    %25 = arith.addf %22, %24 : vector<8x256xf32>
    %cst_23 = arith.constant 0.000000e+00 : f32
    %26 = vector.broadcast %cst_23 : f32 to vector<8x256xf32>
    %27 = arith.maximumf %25, %26 : vector<8x256xf32>
    %c0_24 = arith.constant 0 : index
    %c0_25 = arith.constant 0 : index
    %28 = vector.load %arg5[%c0_24, %c0_25] : memref<8x1xf32, #tpu.memory_space<vmem>>, vector<8x1xf32>
    %29 = vector.broadcast %28 : vector<8x1xf32> to vector<8x256xf32>
    %30 = arith.mulf %27, %29 : vector<8x256xf32>
    %c0_26 = arith.constant 0 : index
    %c0_27 = arith.constant 0 : index
    %31 = vector.load %arg6[%c0_26, %c0_27] : memref<8x1xf32, #tpu.memory_space<vmem>>, vector<8x1xf32>
    %32 = vector.broadcast %31 : vector<8x1xf32> to vector<8x256xf32>
    %33 = arith.addf %30, %32 : vector<8x256xf32>
    %c0_28 = arith.constant 0 : index
    %c0_29 = arith.constant 0 : index
    %c0_30 = arith.constant 0 : index
    %34 = vector.load %arg7[%c0_28, %c0_29, %c0_30] : memref<2x8x256xf32, #tpu.memory_space<vmem>>, vector<1x8x256xf32>
    %35 = vector.shape_cast %34 : vector<1x8x256xf32> to vector<8x256xf32>
    %36 = vector.shape_cast %33 : vector<8x256xf32> to vector<1x8x256xf32>
    tpu.vector_store %arg7[%c0_28, %c0_29, %c0_30], %36 {strides = array<i32>} : memref<2x8x256xf32, #tpu.memory_space<vmem>>, vector<1x8x256xf32>,
    %c0_31 = arith.constant 0 : index
    %c0_32 = arith.constant 0 : index
    %37 = vector.load %arg4[%c0_31, %c0_32] : memref<2x256xf32, #tpu.memory_space<vmem>>, vector<1x256xf32>
    %c1_33 = arith.constant 1 : index
    %c0_34 = arith.constant 0 : index
    %38 = vector.load %arg4[%c1_33, %c0_34] : memref<2x256xf32, #tpu.memory_space<vmem>>, vector<1x256xf32>
    %c0_35 = arith.constant 0 : index
    %c0_36 = arith.constant 0 : index
    %c0_37 = arith.constant 0 : index
    %39 = vector.load %arg2[%c0_35, %c0_36, %c0_37] : memref<3x8x12xbf16, #tpu.memory_space<vmem>>, vector<1x8x12xbf16>
    %40 = vector.shape_cast %39 : vector<1x8x12xbf16> to vector<8x12xbf16>
    %c1_38 = arith.constant 1 : index
    %c0_39 = arith.constant 0 : index
    %c0_40 = arith.constant 0 : index
    %41 = vector.load %arg1[%c1_38, %c0_39, %c0_40] : memref<2x12x384xbf16, #tpu.memory_space<vmem>>, vector<1x12x256xbf16>
    %42 = vector.shape_cast %41 : vector<1x12x256xbf16> to vector<12x256xbf16>
    %cst_41 = arith.constant dense<0.000000e+00> : vector<8x256xf32>
    %43 = tpu.matmul %40, %42, %cst_41 {dimension_numbers = #tpu.dot_dimension_numbers<[1], [0], [0], [1], [0, 0, 1, 1], [], []>} : vector<8x12xbf16>, vector<12x256xbf16>, vector<8x256xf32> -> vector<8x256xf32>
    %c1_42 = arith.constant 1 : index
    %c0_43 = arith.constant 0 : index
    %c0_44 = arith.constant 0 : index
    %44 = vector.load %arg2[%c1_42, %c0_43, %c0_44] : memref<3x8x12xbf16, #tpu.memory_space<vmem>>, vector<1x8x12xbf16>
    %45 = vector.shape_cast %44 : vector<1x8x12xbf16> to vector<8x12xbf16>
    %c1_45 = arith.constant 1 : index
    %c0_46 = arith.constant 0 : index
    %c1_47 = arith.constant 1 : index
    %46 = vector.load %arg1[%c1_45, %c0_46, %c1_47] : memref<2x12x384xbf16, #tpu.memory_space<vmem>>, vector<1x12x256xbf16>
    %47 = vector.shape_cast %46 : vector<1x12x256xbf16> to vector<12x256xbf16>
    %cst_48 = arith.constant dense<0.000000e+00> : vector<8x256xf32>
    %48 = tpu.matmul %45, %47, %cst_48 {dimension_numbers = #tpu.dot_dimension_numbers<[1], [0], [0], [1], [0, 0, 1, 1], [], []>} : vector<8x12xbf16>, vector<12x256xbf16>, vector<8x256xf32> -> vector<8x256xf32>
    %c2_49 = arith.constant 2 : index
    %c0_50 = arith.constant 0 : index
    %c0_51 = arith.constant 0 : index
    %49 = vector.load %arg2[%c2_49, %c0_50, %c0_51] : memref<3x8x12xbf16, #tpu.memory_space<vmem>>, vector<1x8x12xbf16>
    %50 = vector.shape_cast %49 : vector<1x8x12xbf16> to vector<8x12xbf16>
    %c1_52 = arith.constant 1 : index
    %c0_53 = arith.constant 0 : index
    %c2_54 = arith.constant 2 : index
    %51 = vector.load %arg1[%c1_52, %c0_53, %c2_54] : memref<2x12x384xbf16, #tpu.memory_space<vmem>>, vector<1x12x256xbf16>
    %52 = vector.shape_cast %51 : vector<1x12x256xbf16> to vector<12x256xbf16>
    %cst_55 = arith.constant dense<0.000000e+00> : vector<8x256xf32>
    %53 = tpu.matmul %50, %52, %cst_55 {dimension_numbers = #tpu.dot_dimension_numbers<[1], [0], [0], [1], [0, 0, 1, 1], [], []>} : vector<8x12xbf16>, vector<12x256xbf16>, vector<8x256xf32> -> vector<8x256xf32>
    %54 = vector.broadcast %37 : vector<1x256xf32> to vector<8x256xf32>
    %55 = arith.mulf %43, %54 : vector<8x256xf32>
    %56 = arith.addf %55, %48 : vector<8x256xf32>
    %57 = vector.broadcast %38 : vector<1x256xf32> to vector<8x256xf32>
    %58 = arith.mulf %53, %57 : vector<8x256xf32>
    %59 = arith.addf %56, %58 : vector<8x256xf32>
    %c0_56 = arith.constant 0 : index
    %c0_57 = arith.constant 0 : index
    %60 = vector.load %arg3[%c0_56, %c0_57] : memref<8x1xf32, #tpu.memory_space<vmem>>, vector<8x1xf32>
    %61 = vector.broadcast %60 : vector<8x1xf32> to vector<8x256xf32>
    %62 = arith.addf %59, %61 : vector<8x256xf32>
    %cst_58 = arith.constant 0.000000e+00 : f32
    %63 = vector.broadcast %cst_58 : f32 to vector<8x256xf32>
    %64 = arith.maximumf %62, %63 : vector<8x256xf32>
    %c0_59 = arith.constant 0 : index
    %c0_60 = arith.constant 0 : index
    %65 = vector.load %arg5[%c0_59, %c0_60] : memref<8x1xf32, #tpu.memory_space<vmem>>, vector<8x1xf32>
    %66 = vector.broadcast %65 : vector<8x1xf32> to vector<8x256xf32>
    %67 = arith.mulf %64, %66 : vector<8x256xf32>
    %c0_61 = arith.constant 0 : index
    %c0_62 = arith.constant 0 : index
    %68 = vector.load %arg6[%c0_61, %c0_62] : memref<8x1xf32, #tpu.memory_space<vmem>>, vector<8x1xf32>
    %69 = vector.broadcast %68 : vector<8x1xf32> to vector<8x256xf32>
    %70 = arith.addf %67, %69 : vector<8x256xf32>
    %c1_63 = arith.constant 1 : index
    %c0_64 = arith.constant 0 : index
    %c0_65 = arith.constant 0 : index
    %71 = vector.load %arg7[%c1_63, %c0_64, %c0_65] : memref<2x8x256xf32, #tpu.memory_space<vmem>>, vector<1x8x256xf32>
    %72 = vector.shape_cast %71 : vector<1x8x256xf32> to vector<8x256xf32>
    %73 = vector.shape_cast %70 : vector<8x256xf32> to vector<1x8x256xf32>
    tpu.vector_store %arg7[%c1_63, %c0_64, %c0_65], %73 {strides = array<i32>} : memref<2x8x256xf32, #tpu.memory_space<vmem>>, vector<1x8x256xf32>,
    return
  }
  func.func @transform_0(%arg0: i32) -> (i32, i32, i32) {
    %c0_i32 = arith.constant 0 : i32
    %c0_i32_0 = arith.constant 0 : i32
    %c0_i32_1 = arith.constant 0 : i32
    return %arg0, %c0_i32, %c0_i32_0 : i32, i32, i32
  }
  func.func @transform_1(%arg0: i32) -> (i32, i32, i32) {
    %c0_i32 = arith.constant 0 : i32
    %c0_i32_0 = arith.constant 0 : i32
    %c0_i32_1 = arith.constant 0 : i32
    %c0_i32_2 = arith.constant 0 : i32
    return %c0_i32, %c0_i32_0, %c0_i32_1 : i32, i32, i32
  }
  func.func @transform_2(%arg0: i32) -> (i32, i32) {
    %c0_i32 = arith.constant 0 : i32
    %c0_i32_0 = arith.constant 0 : i32
    %c0_i32_1 = arith.constant 0 : i32
    return %c0_i32, %c0_i32_0 : i32, i32
  }
  func.func @transform_3(%arg0: i32) -> (i32, i32) {
    %c0_i32 = arith.constant 0 : i32
    %c0_i32_0 = arith.constant 0 : i32
    %c0_i32_1 = arith.constant 0 : i32
    return %c0_i32, %c0_i32_0 : i32, i32
  }
  func.func @transform_4(%arg0: i32) -> (i32, i32) {
    %c0_i32 = arith.constant 0 : i32
    %c0_i32_0 = arith.constant 0 : i32
    %c0_i32_1 = arith.constant 0 : i32
    return %c0_i32, %c0_i32_0 : i32, i32
  }
  func.func @transform_5(%arg0: i32) -> (i32, i32) {
    %c0_i32 = arith.constant 0 : i32
    %c0_i32_0 = arith.constant 0 : i32
    %c0_i32_1 = arith.constant 0 : i32
    return %c0_i32, %c0_i32_0 : i32, i32
  }
  func.func @transform_6(%arg0: i32) -> (i32, i32, i32) {
    %c0_i32 = arith.constant 0 : i32
    %c0_i32_0 = arith.constant 0 : i32
    %c0_i32_1 = arith.constant 0 : i32
    return %arg0, %c0_i32, %c0_i32_0 : i32, i32, i32
  }
}

</mosaic_0001>

<bundles_post_ra>
// kernel: conv_block_forward.2
= control target key start
LH: loop header
LB: loop body
LE: loop exit
PB: predicated region body
PF: predicated region fallthrough
CT: control target
= control target key end

     0   :  { %s502_s27 = smov 127   ;;  %s503_s28 = smov 126   ;;  %vm36_vm0 = vcmask 1045504   ;;  %vm32_vm1 = vcmask 97280   ;;  %vm140_vm2 = vcmask 1031168   ;;  %v504_v33 = vmov 0   ;;  %s667_s0 = inlined_call_operand.vmem [shape: bf16[2,12,384], index: 0, kind: input, shape index: {}]   ;;  %s668_s1 = inlined_call_operand.vmem [shape: bf16[3,8,12], index: 1, kind: input, shape index: {}]   ;;  %s669_s2 = inlined_call_operand.vmem [shape: f32[8,1], index: 2, kind: input, shape index: {}]   ;;  %s670_s3 = inlined_call_operand.vmem [shape: f32[2,256], index: 3, kind: input, shape index: {}]   ;;  %s671_s4 = inlined_call_operand.vmem [shape: f32[2,8,2], index: 4, kind: output, shape index: {}]  }
   0x1   :  { %v435_v0 = vld [vmem:[%s667_s0] sm:$0xf]  ;;  %v490_v1 = vld [vmem:[%s667_s0 + $0x8] sm:$0x30]  ;;  %v443_v2 = vld [vmem:[%s667_s0 + $0x8] sm:$0xf]  ;;  %500 = vset.pattern.permute.xlu0 %v504_v33  ;;  %501 = vset.pattern.permute.xlu1 %v504_v33 }
   0x2   :  { %v436_v3 = vor.u32 %v490_v1, %v435_v0  ;;  %v491_v4 = vld [vmem:[%s667_s0 + $0x10] sm:$0x30]  ;;  %v489_v5 = vld [vmem:[%s667_s0 + $0x4] sm:$0xf]  ;;  %v437_v6 = vld [vmem:[%s667_s0 + $0xc] sm:$0x30] }
   0x3   :  { %v444_v7 = vor.u32 %v491_v4, %v443_v2  ;;  %v440_v8 = vor.u32 %v489_v5, %v437_v6  ;;  %v494_v9 = vld [vmem:[%s667_s0 + $0x1c] sm:$0xf]  ;;  %v470_v10 = vld [vmem:[%s667_s0 + $0x18] sm:$0xf]  ;;  %v495_v11 = vld [vmem:[%s667_s0 + $0x20] sm:$0x30] }
   0x4   :  { %88 = vrot.lane.b32.xlu0 %v436_v3, %s502_s27  ;;  %v472_v12 = vld [vmem:[%s667_s0 + $0x24] sm:$0x30]  ;;  %v478_v13 = vld [vmem:[%s667_s0 + $0x20] sm:$0xf]  ;;  %v496_v14 = vld [vmem:[%s667_s0 + $0x28] sm:$0x30]  ;;  %v471_v15 = vor.u32 %v495_v11, %v470_v10 }
   0x5   :  { %92 = vrot.lane.b32.xlu1 %v444_v7, %s502_s27  ;;  %136 = vrot.lane.b32.xlu2 %v440_v8, %s503_s28  ;;  %v475_v16 = vor.u32 %v494_v9, %v472_v12  ;;  %v479_v17 = vor.u32 %v496_v14, %v478_v13  ;;  %v424_v18 = vld [vmem:[%s667_s0] sm:$0xf]  ;;  %v488_v19 = vld [vmem:[%s667_s0 + $0x8] sm:$0x30]  ;;  %vm94_vm3 = vcmask 1039360   ;;  %vm217_vm4 = vcmask 7168  }
   0x6   :  { %v487_v20 = vld [vmem:[%s667_s0 + $0x4] sm:$0xf]  ;;  %v425_v21 = vor.u32 %v488_v19, %v424_v18  ;;  %v426_v22 = vld [vmem:[%s667_s0 + $0xc] sm:$0x30]  ;;  %v21_v26 = vld [vmem:[%s668_s1] sm:$0xf] }
   0x7   :  { %v429_v23 = vor.u32 %v487_v20, %v426_v22  ;;  %v447_v31 = vld [vmem:[%s668_s1 + $0x8] sm:$0xf]  ;;  %v196_v32 = vld [vmem:[%s669_s2] sm:$0xff]  ;;  %v455_v36 = vld [vmem:[%s667_s0 + $0x18] sm:$0xf]  ;;  %vm219_vm5 = vcmask 15368  }
   0x8   :  { %v38_v24 = vsel %vm36_vm0, %v425_v21, 0  ;;  %v493_v37 = vld [vmem:[%s667_s0 + $0x20] sm:$0x30]  ;;  %v492_v38 = vld [vmem:[%s667_s0 + $0x1c] sm:$0xf] }
   0x9   :  { %50 = vmatpush.bf16.msra.mxu0 %v38_v24  ;;  %v41_v25 = vsel %vm36_vm0, %v429_v23, 0  ;;  %v457_v39 = vld [vmem:[%s667_s0 + $0x24] sm:$0x30]  ;;  %v456_v40 = vor.u32 %v493_v37, %v455_v36  ;;  %v432_v52 = vld [vmem:[%s668_s1 + $0x4] sm:$0xf] }
   0xa   :  { %63 = vmatpush.bf16.msra.mxu1 %v41_v25  ;;  %v460_v41 = vor.u32 %v492_v38, %v457_v39  ;;  %v223_v1 = vld [vmem:[%s668_s1] sm:$0xf]  ;;  %v463_v4 = vld [vmem:[%s668_s1 + $0x4] sm:$0xf]  ;;  %v482_v5 = vld [vmem:[%s668_s1 + $0x8] sm:$0xf] }
   0xb   :  { %v239_v46 = vsel %vm36_vm0, %v456_v40, 0  ;;  %v18_v12 = vld [vmem:[%s670_s3] ss:$2 sm:$0x3] }
   0xc   :  { %90 = vrot.lane.b32.xlu0 %v440_v8, %s502_s27  ;;  %430 = vmatmul.msk.bf16.vlgmr.msra.gmra.mxu0 %vm32_vm1, %v21_v26  ;;  %v242_v50 = vsel %vm36_vm0, %v460_v41, 0  ;;  %v421_v13 = vld [vmem:[%s670_s3 + $0x1] ss:$2 sm:$0x3]  ;;  %v179_v14 = vperm.slane %v18_v12, 0 }
   0xd   :  { %134 = vrot.lane.b32.xlu1 %v436_v3, %s503_s28  ;;  %138 = vrot.lane.b32.xlu2 %v444_v7, %s503_s28  ;;  %v189_v18 = vperm.slane %v421_v13, 1 }
   0xe   :  { %431 = vmatmul.msk.bf16.vlgmr.msra.gmra.mxu1 %vm32_vm1, %v21_v26 }
  0x14   :  { %332 = vrot.lane.b32.xlu0 %v471_v15, %s503_s28 }
  0x15   :  { %334 = vrot.lane.b32.xlu1 %v475_v16, %s503_s28  ;;  %336 = vrot.lane.b32.xlu2 %v479_v17, %s503_s28 }
  0x1c   :  { %288 = vrot.lane.b32.xlu0 %v471_v15, %s502_s27  ;;  %v180_v15 = vperm.slane %v18_v12, 1 }
  0x1d   :  { %290 = vrot.lane.b32.xlu1 %v475_v16, %s502_s27  ;;  %292 = vrot.lane.b32.xlu2 %v479_v17, %s502_s27  ;;  %v188_v17 = vperm.slane %v421_v13, 0 }
  0x24   :  { %199 = vperm.xlu0 %500, %v196_v32  }
  0x25   :  { %396 = vperm.xlu1 %501, %v196_v32  }
  0x5f   :  { %v137_v27 = vpop.permute.xlu2 %136 }
  0x67   :  { %v139_v28 = vpop.permute.xlu2 %138 }
  0x68   :  { %v142_v29 = vsel %vm140_vm2, %v137_v27, %v139_v28 }
  0x69   :  { %v150_v30 = vsel %vm36_vm0, %v142_v29, 0 }
  0x6a   :  { %172 = vmatpush.bf16.msrb.mxu1 %v150_v30 }
  0x6d   :  { %449 = vmatmul.msk.bf16.vlgmr.msrb.gmra.mxu1 %vm32_vm1, %v447_v31 }
  0x6f   :  { %v337_v53 = vpop.permute.xlu2 %336 }
  0x76   :  { %v89_v34 = vpop.permute.xlu0 %88 }
  0x77   :  { %v93_v35 = vpop.permute.xlu1 %92  ;;  %v293_v60 = vpop.permute.xlu2 %292 }
  0x7e   :  { %v91_v42 = vpop.permute.xlu0 %90 }
  0x7f   :  { %v135_v43 = vpop.permute.xlu1 %134  ;;  %v95_v44 = vsel %vm94_vm3, %v89_v34, %v91_v42  ;;  %v96_v45 = vsel %vm94_vm3, %v91_v42, %v93_v35 }
  0x80   :  { %v101_v47 = vsel %vm36_vm0, %v95_v44, 0  ;;  %v104_v48 = vsel %vm36_vm0, %v96_v45, 0  ;;  %v141_v49 = vsel %vm140_vm2, %v135_v43, %v137_v27  ;;  %v221_v44 = vld [vmem:[%s670_s3] ss:$2 sm:$0x3] }
  0x81   :  { %113 = vmatpush.bf16.msra.mxu2 %v101_v47  ;;  %126 = vmatpush.bf16.msra.mxu3 %v104_v48  ;;  %v147_v51 = vsel %vm36_vm0, %v141_v49, 0  ;;  %v376_v47 = vperm.slane %v221_v44, 0  ;;  %v377_v48 = vperm.slane %v221_v44, 1  ;;  %v450_v49 = vld [vmem:[%s670_s3 + $0x1] ss:$2 sm:$0x3] }
  0x82   :  { %159 = vmatpush.bf16.msrb.mxu0 %v147_v51 }
  0x84   :  { %445 = vmatmul.msk.bf16.vlgmr.msra.gmra.mxu2 %vm32_vm1, %v432_v52  ;;  %446 = vmatmul.msk.bf16.vlgmr.msra.gmra.mxu3 %vm32_vm1, %v432_v52  ;;  %v385_v52 = vperm.slane %v450_v49, 0 }
  0x85   :  { %251 = vmatpush.bf16.msrb.mxu2 %v239_v46  ;;  %264 = vmatpush.bf16.msrb.mxu3 %v242_v50 }
  0x86   :  { %448 = vmatmul.msk.bf16.vlgmr.msrb.gmra.mxu0 %vm32_vm1, %v447_v31  ;;  %v333_v54 = vpop.permute.xlu0 %332 }
  0x87   :  { %v335_v55 = vpop.permute.xlu1 %334 }
  0x88   :  { %v339_v56 = vsel %vm140_vm2, %v335_v55, %v337_v53  ;;  %v338_v57 = vsel %vm140_vm2, %v333_v54, %v335_v55  ;;  %v386_v53 = vperm.slane %v450_v49, 1 }
  0x89   :  { %v347_v58 = vsel %vm36_vm0, %v339_v56, 0  ;;  %v344_v59 = vsel %vm36_vm0, %v338_v57, 0  ;;  %v52_v6 = vpop.f32.mrf.mxu0 }
  0x8a   :  { %356 = vmatpush.bf16.msra.mxu2 %v344_v59  ;;  %369 = vmatpush.bf16.msra.mxu3 %v347_v58  ;;  %v183_v19 = vmul.f32 %v179_v14, %v52_v6 }
  0x8b   :  { %v65_v7 = vpop.f32.mrf.mxu1 }
  0x8c   :  { %v184_v20 = vmul.f32 %v180_v15, %v65_v7 }
  0x8e   :  { %v289_v61 = vpop.permute.xlu0 %288 }
  0x8f   :  { %v291_v62 = vpop.permute.xlu1 %290 }
  0x90   :  { %v295_v63 = vsel %vm94_vm3, %v291_v62, %v293_v60  ;;  %v294_v0 = vsel %vm94_vm3, %v289_v61, %v291_v62 }
  0x91   :  { %v303_v2 = vsel %vm36_vm0, %v295_v63, 0  ;;  %v300_v3 = vsel %vm36_vm0, %v294_v0, 0  ;;  %v54_v8 = vpop.f32.mrf.mxu0 }
  0x92   :  { %312 = vmatpush.bf16.msra.mxu0 %v300_v3  ;;  %325 = vmatpush.bf16.msra.mxu1 %v303_v2 }
  0x93   :  { %v67_v9 = vpop.f32.mrf.mxu1 }
  0x94   :  { %461 = vmatmul.msk.bf16.vlgmr.msrb.gmra.mxu2 %vm32_vm1, %v223_v1  ;;  %462 = vmatmul.msk.bf16.vlgmr.msrb.gmra.mxu3 %vm32_vm1, %v223_v1 }
  0x95   :  { %481 = vmatmul.msk.bf16.vlgmr.msra.gmra.mxu1 %vm32_vm1, %v463_v4 }
  0x96   :  { %480 = vmatmul.msk.bf16.vlgmr.msra.gmra.mxu0 %vm32_vm1, %v463_v4  ;;  %v200_v27 = vpop.permute.xlu0 %199 }
  0x97   :  { %v397_v60 = vpop.permute.xlu1 %396 }
  0xa4   :  { %483 = vmatmul.msk.bf16.vlgmr.msra.gmra.mxu2 %vm32_vm1, %v482_v5  ;;  %484 = vmatmul.msk.bf16.vlgmr.msra.gmra.mxu3 %vm32_vm1, %v482_v5 }
  0xea   :  { %v174_v10 = vpop.f32.mrf.mxu1 }
  0xeb   :  { %v193_v22 = vmul.f32 %v189_v18, %v174_v10 }
  0xf2   :  { %v176_v11 = vpop.f32.mrf.mxu1 }
 0x103   :  { %v161_v16 = vpop.f32.mrf.mxu0 }
 0x104   :  { %v192_v21 = vmul.f32 %v188_v17, %v161_v16 }
 0x107   :  { %v115_v23 = vpop.f32.mrf.mxu2  ;;  %v128_v24 = vpop.f32.mrf.mxu3 }
 0x108   :  { %v185_v25 = vadd.f32 %v183_v19, %v115_v23  ;;  %v186_v26 = vadd.f32 %v184_v20, %v128_v24 }
 0x10a   :  { %v194_v28 = vadd.f32 %v192_v21, %v185_v25  ;;  %v195_v29 = vadd.f32 %v193_v22, %v186_v26 }
 0x10b   :  { %v163_v30 = vpop.f32.mrf.mxu0 }
 0x10c   :  { %v202_v31 = vadd.f32 %v200_v27, %v194_v28  ;;  %v203_v32 = vadd.f32 %v200_v27, %v195_v29 }
 0x10e   :  { %v204_v33 = vmax.f32 %v202_v31, 0.0  ;;  %v205_v34 = vmax.f32 %v203_v32, 0.0 }
 0x10f   :  { %v117_v35 = vpop.f32.mrf.mxu2  ;;  %v130_v36 = vpop.f32.mrf.mxu3 }
 0x110   :  { %v206_v37 = vadd.f32 %v205_v34, %v204_v33 }
 0x112   :  { %207 = vadd.xlane.f32.xlu2 %v206_v37  ;;  %v327_v39 = vpop.f32.mrf.mxu1 }
 0x113   :  { %v314_v38 = vpop.f32.mrf.mxu0 }
 0x117   :  { %v253_v40 = vpop.f32.mrf.mxu2  ;;  %v266_v41 = vpop.f32.mrf.mxu3 }
 0x118   :  { %v380_v50 = vmul.f32 %v376_v47, %v253_v40  ;;  %v381_v51 = vmul.f32 %v377_v48, %v266_v41 }
 0x11a   :  { %v329_v43 = vpop.f32.mrf.mxu1  ;;  %v382_v56 = vadd.f32 %v380_v50, %v314_v38  ;;  %v383_v57 = vadd.f32 %v381_v51, %v327_v39 }
 0x11b   :  { %v316_v42 = vpop.f32.mrf.mxu0 }
 0x11f   :  { %v255_v45 = vpop.f32.mrf.mxu2  ;;  %v268_v46 = vpop.f32.mrf.mxu3 }
 0x127   :  { %v358_v54 = vpop.f32.mrf.mxu2  ;;  %v371_v55 = vpop.f32.mrf.mxu3 }
 0x128   :  { %v389_v58 = vmul.f32 %v385_v52, %v358_v54  ;;  %v390_v59 = vmul.f32 %v386_v53, %v371_v55 }
 0x12a   :  { %v391_v61 = vadd.f32 %v389_v58, %v382_v56  ;;  %v392_v62 = vadd.f32 %v390_v59, %v383_v57 }
 0x12c   :  { %v399_v63 = vadd.f32 %v397_v60, %v391_v61  ;;  %v400_v0 = vadd.f32 %v397_v60, %v392_v62 }
 0x12e   :  { %v401_v1 = vmax.f32 %v399_v63, 0.0  ;;  %v402_v2 = vmax.f32 %v400_v0, 0.0 }
 0x12f   :  { %v360_v3 = vpop.f32.mrf.mxu2  ;;  %v373_v4 = vpop.f32.mrf.mxu3 }
 0x130   :  { %v403_v5 = vadd.f32 %v402_v2, %v401_v1 }
 0x132   :  { %404 = vadd.xlane.f32.xlu1 %v403_v5 }
 0x185   :  { %v208_v6 = vpop.xlane.xlu2 %207 }
 0x186   :  { %v209_v7 = vmul.f32 0.00390625, %v208_v6  ;;  %218 = vst.msk [vmem:[%s671_s4] sm:$0xff] %vm217_vm4, %v208_v6 }
 0x188   :  { %v210_v8 = vsub.f32 %v204_v33, %v209_v7  ;;  %v211_v9 = vsub.f32 %v205_v34, %v209_v7 }
 0x18a   :  { %v212_v10 = vmul.f32 %v210_v8, %v210_v8  ;;  %v213_v11 = vmul.f32 %v211_v9, %v211_v9 }
 0x18c   :  { %v214_v12 = vadd.f32 %v213_v11, %v212_v10 }
 0x18e   :  { %215 = vadd.xlane.f32.xlu0 %v214_v12 }
 0x1a5   :  { %v405_v13 = vpop.xlane.xlu1 %404 }
 0x1a6   :  { %v406_v14 = vmul.f32 0.00390625, %v405_v13  ;;  %485 = vst.msk [vmem:[%s671_s4 + $0x8] sm:$0xff] %vm217_vm4, %v405_v13 }
 0x1a8   :  { %v407_v15 = vsub.f32 %v401_v1, %v406_v14  ;;  %v408_v16 = vsub.f32 %v402_v2, %v406_v14 }
 0x1aa   :  { %v409_v17 = vmul.f32 %v407_v15, %v407_v15  ;;  %v410_v18 = vmul.f32 %v408_v16, %v408_v16 }
 0x1ac   :  { %v411_v19 = vadd.f32 %v410_v18, %v409_v17 }
 0x1ae   :  { %412 = vadd.xlane.f32.xlu2 %v411_v19 }
 0x201   :  { %v216_v20 = vpop.xlane.xlu0 %215 }
 0x202   :  { %220 = vst.msk [vmem:[%s671_s4] sm:$0xff] %vm219_vm5, %v216_v20 }
 0x221   :  { %v413_v21 = vpop.xlane.xlu2 %412 }
 0x222   :  { %486 = vst.msk [vmem:[%s671_s4 + $0x8] sm:$0xff] %vm219_vm5, %v413_v21 }

// kernel: conv_block_forward.3
= control target key start
LH: loop header
LB: loop body
LE: loop exit
PB: predicated region body
PF: predicated region fallthrough
CT: control target
= control target key end

     0   :  { %s517_s9 = smov 127   ;;  %s518_s10 = smov 126   ;;  %vm42_vm0 = vcmask 1045504   ;;  %vm38_vm1 = vcmask 97280   ;;  %vm146_vm2 = vcmask 1031168   ;;  %v519_v33 = vmov 0   ;;  %s698_s0 = inlined_call_operand.vmem [shape: bf16[2,12,384], index: 0, kind: input, shape index: {}]   ;;  %s699_s1 = inlined_call_operand.vmem [shape: bf16[3,8,12], index: 1, kind: input, shape index: {}]   ;;  %s700_s2 = inlined_call_operand.vmem [shape: f32[8,1], index: 2, kind: input, shape index: {}]   ;;  %s701_s4 = inlined_call_operand.vmem [shape: f32[8,1], index: 4, kind: input, shape index: {}]   ;;  %s702_s5 = inlined_call_operand.vmem [shape: f32[8,1], index: 5, kind: input, shape index: {}]   ;;  %s703_s3 = inlined_call_operand.vmem [shape: f32[2,256], index: 3, kind: input, shape index: {}]   ;;  %s704_s6 = inlined_call_operand.vmem [shape: f32[2,8,256], index: 6, kind: output, shape index: {}]  }
   0x1   :  { %v449_v0 = vld [vmem:[%s698_s0] sm:$0xf]  ;;  %v504_v1 = vld [vmem:[%s698_s0 + $0x8] sm:$0x30]  ;;  %v457_v2 = vld [vmem:[%s698_s0 + $0x8] sm:$0xf]  ;;  %514 = vset.pattern.permute.xlu0 %v519_v33  ;;  %515 = vset.pattern.permute.xlu1 %v519_v33 }
   0x2   :  { %v450_v3 = vor.u32 %v504_v1, %v449_v0  ;;  %v505_v4 = vld [vmem:[%s698_s0 + $0x10] sm:$0x30]  ;;  %v503_v5 = vld [vmem:[%s698_s0 + $0x4] sm:$0xf]  ;;  %v451_v6 = vld [vmem:[%s698_s0 + $0xc] sm:$0x30]  ;;  %516 = vset.pattern.permute.xlu2 %v519_v33 }
   0x3   :  { %v458_v7 = vor.u32 %v505_v4, %v457_v2  ;;  %v454_v8 = vor.u32 %v503_v5, %v451_v6  ;;  %v508_v9 = vld [vmem:[%s698_s0 + $0x1c] sm:$0xf]  ;;  %v484_v10 = vld [vmem:[%s698_s0 + $0x18] sm:$0xf]  ;;  %v509_v11 = vld [vmem:[%s698_s0 + $0x20] sm:$0x30] }
   0x4   :  { %94 = vrot.lane.b32.xlu0 %v450_v3, %s517_s9  ;;  %v486_v12 = vld [vmem:[%s698_s0 + $0x24] sm:$0x30]  ;;  %v492_v13 = vld [vmem:[%s698_s0 + $0x20] sm:$0xf]  ;;  %v510_v14 = vld [vmem:[%s698_s0 + $0x28] sm:$0x30]  ;;  %v485_v15 = vor.u32 %v509_v11, %v484_v10 }
   0x5   :  { %98 = vrot.lane.b32.xlu1 %v458_v7, %s517_s9  ;;  %142 = vrot.lane.b32.xlu2 %v454_v8, %s518_s10  ;;  %v489_v16 = vor.u32 %v508_v9, %v486_v12  ;;  %v493_v17 = vor.u32 %v510_v14, %v492_v13  ;;  %v438_v18 = vld [vmem:[%s698_s0] sm:$0xf]  ;;  %v502_v19 = vld [vmem:[%s698_s0 + $0x8] sm:$0x30]  ;;  %vm100_vm3 = vcmask 1039360  }
   0x6   :  { %v501_v20 = vld [vmem:[%s698_s0 + $0x4] sm:$0xf]  ;;  %v439_v21 = vor.u32 %v502_v19, %v438_v18  ;;  %v440_v22 = vld [vmem:[%s698_s0 + $0xc] sm:$0x30]  ;;  %v27_v26 = vld [vmem:[%s699_s1] sm:$0xf] }
   0x7   :  { %v443_v23 = vor.u32 %v501_v20, %v440_v22  ;;  %v461_v31 = vld [vmem:[%s699_s1 + $0x8] sm:$0xf]  ;;  %v202_v32 = vld [vmem:[%s700_s2] sm:$0xff]  ;;  %v469_v36 = vld [vmem:[%s698_s0 + $0x18] sm:$0xf] }
   0x8   :  { %v44_v24 = vsel %vm42_vm0, %v439_v21, 0  ;;  %v507_v37 = vld [vmem:[%s698_s0 + $0x20] sm:$0x30]  ;;  %v506_v38 = vld [vmem:[%s698_s0 + $0x1c] sm:$0xf] }
   0x9   :  { %56 = vmatpush.bf16.msra.mxu0 %v44_v24  ;;  %v47_v25 = vsel %vm42_vm0, %v443_v23, 0  ;;  %v471_v39 = vld [vmem:[%s698_s0 + $0x24] sm:$0x30]  ;;  %v470_v40 = vor.u32 %v507_v37, %v469_v36  ;;  %v446_v52 = vld [vmem:[%s699_s1 + $0x4] sm:$0xf] }
   0xa   :  { %69 = vmatpush.bf16.msra.mxu1 %v47_v25  ;;  %v474_v41 = vor.u32 %v506_v38, %v471_v39  ;;  %v212_v54 = vld [vmem:[%s701_s4] sm:$0xff] }
   0xb   :  { %v248_v46 = vsel %vm42_vm0, %v470_v40, 0  ;;  %v220_v55 = vld [vmem:[%s702_s5] sm:$0xff] }
   0xc   :  { %96 = vrot.lane.b32.xlu0 %v454_v8, %s517_s9  ;;  %444 = vmatmul.msk.bf16.vlgmr.msra.gmra.mxu0 %vm38_vm1, %v27_v26  ;;  %v251_v50 = vsel %vm42_vm0, %v474_v41, 0  ;;  %v477_v6 = vld [vmem:[%s699_s1 + $0x4] sm:$0xf]  ;;  %v24_v14 = vld [vmem:[%s703_s3] ss:$2 sm:$0x3] }
   0xd   :  { %140 = vrot.lane.b32.xlu1 %v450_v3, %s518_s10  ;;  %144 = vrot.lane.b32.xlu2 %v458_v7, %s518_s10  ;;  %v232_v3 = vld [vmem:[%s699_s1] sm:$0xf]  ;;  %v496_v7 = vld [vmem:[%s699_s1 + $0x8] sm:$0xf] }
   0xe   :  { %445 = vmatmul.msk.bf16.vlgmr.msra.gmra.mxu1 %vm38_vm1, %v27_v26 }
  0x14   :  { %341 = vrot.lane.b32.xlu0 %v485_v15, %s518_s10 }
  0x15   :  { %343 = vrot.lane.b32.xlu1 %v489_v16, %s518_s10  ;;  %345 = vrot.lane.b32.xlu2 %v493_v17, %s518_s10 }
  0x1c   :  { %297 = vrot.lane.b32.xlu0 %v485_v15, %s517_s9  ;;  %v435_v15 = vld [vmem:[%s703_s3 + $0x1] ss:$2 sm:$0x3] }
  0x1d   :  { %299 = vrot.lane.b32.xlu1 %v489_v16, %s517_s9  ;;  %301 = vrot.lane.b32.xlu2 %v493_v17, %s517_s9  ;;  %v185_v16 = vperm.slane %v24_v14, 0  ;;  %v186_v17 = vperm.slane %v24_v14, 1  ;;  %v194_v19 = vperm.slane %v435_v15, 0  ;;  %v195_v20 = vperm.slane %v435_v15, 1 }
  0x24   :  { %205 = vperm.xlu0 %514, %v202_v32  }
  0x25   :  { %405 = vperm.xlu1 %515, %v202_v32   ;;  %215 = vperm.xlu2 %516, %v212_v54  }
  0x2c   :  { %423 = vperm.xlu0 %514, %v220_v55  }
  0x2d   :  { %415 = vperm.xlu1 %515, %v212_v54   ;;  %223 = vperm.xlu2 %516, %v220_v55  }
  0x5f   :  { %v143_v27 = vpop.permute.xlu2 %142 }
  0x67   :  { %v145_v28 = vpop.permute.xlu2 %144 }
  0x68   :  { %v148_v29 = vsel %vm146_vm2, %v143_v27, %v145_v28 }
  0x69   :  { %v156_v30 = vsel %vm42_vm0, %v148_v29, 0 }
  0x6a   :  { %178 = vmatpush.bf16.msrb.mxu1 %v156_v30 }
  0x6d   :  { %463 = vmatmul.msk.bf16.vlgmr.msrb.gmra.mxu1 %vm38_vm1, %v461_v31 }
  0x6f   :  { %v346_v53 = vpop.permute.xlu2 %345 }
  0x76   :  { %v95_v34 = vpop.permute.xlu0 %94 }
  0x77   :  { %v99_v35 = vpop.permute.xlu1 %98  ;;  %v302_v62 = vpop.permute.xlu2 %301 }
  0x7e   :  { %v97_v42 = vpop.permute.xlu0 %96 }
  0x7f   :  { %v141_v43 = vpop.permute.xlu1 %140  ;;  %v101_v44 = vsel %vm100_vm3, %v95_v34, %v97_v42  ;;  %v102_v45 = vsel %vm100_vm3, %v97_v42, %v99_v35  ;;  %v216_v23 = vpop.permute.xlu2 %215 }
  0x80   :  { %v107_v47 = vsel %vm42_vm0, %v101_v44, 0  ;;  %v110_v48 = vsel %vm42_vm0, %v102_v45, 0  ;;  %v147_v49 = vsel %vm146_vm2, %v141_v43, %v143_v27 }
  0x81   :  { %119 = vmatpush.bf16.msra.mxu2 %v107_v47  ;;  %132 = vmatpush.bf16.msra.mxu3 %v110_v48  ;;  %v153_v51 = vsel %vm42_vm0, %v147_v49, 0 }
  0x82   :  { %165 = vmatpush.bf16.msrb.mxu0 %v153_v51  ;;  %v230_v51 = vld [vmem:[%s703_s3] ss:$2 sm:$0x3] }
  0x83   :  { %v385_v54 = vperm.slane %v230_v51, 0  ;;  %v386_v55 = vperm.slane %v230_v51, 1 }
  0x84   :  { %459 = vmatmul.msk.bf16.vlgmr.msra.gmra.mxu2 %vm38_vm1, %v446_v52  ;;  %460 = vmatmul.msk.bf16.vlgmr.msra.gmra.mxu3 %vm38_vm1, %v446_v52 }
  0x85   :  { %260 = vmatpush.bf16.msrb.mxu2 %v248_v46  ;;  %273 = vmatpush.bf16.msrb.mxu3 %v251_v50 }
  0x86   :  { %462 = vmatmul.msk.bf16.vlgmr.msrb.gmra.mxu0 %vm38_vm1, %v461_v31  ;;  %v342_v56 = vpop.permute.xlu0 %341 }
  0x87   :  { %v344_v57 = vpop.permute.xlu1 %343  ;;  %v224_v38 = vpop.permute.xlu2 %223 }
  0x88   :  { %v348_v58 = vsel %vm146_vm2, %v344_v57, %v346_v53  ;;  %v347_v59 = vsel %vm146_vm2, %v342_v56, %v344_v57  ;;  %v464_v56 = vld [vmem:[%s703_s3 + $0x1] ss:$2 sm:$0x3] }
  0x89   :  { %v356_v60 = vsel %vm42_vm0, %v348_v58, 0  ;;  %v353_v61 = vsel %vm42_vm0, %v347_v59, 0  ;;  %v58_v8 = vpop.f32.mrf.mxu0 }
  0x8a   :  { %365 = vmatpush.bf16.msra.mxu2 %v353_v61  ;;  %378 = vmatpush.bf16.msra.mxu3 %v356_v60  ;;  %v189_v21 = vmul.f32 %v185_v16, %v58_v8  ;;  %v394_v60 = vperm.slane %v464_v56, 0  ;;  %v395_v61 = vperm.slane %v464_v56, 1 }
  0x8b   :  { %v71_v9 = vpop.f32.mrf.mxu1 }
  0x8c   :  { %v190_v22 = vmul.f32 %v186_v17, %v71_v9 }
  0x8e   :  { %v298_v63 = vpop.permute.xlu0 %297 }
  0x8f   :  { %v300_v0 = vpop.permute.xlu1 %299 }
  0x90   :  { %v304_v1 = vsel %vm100_vm3, %v300_v0, %v302_v62  ;;  %v303_v2 = vsel %vm100_vm3, %v298_v63, %v300_v0 }
  0x91   :  { %v312_v4 = vsel %vm42_vm0, %v304_v1, 0  ;;  %v309_v5 = vsel %vm42_vm0, %v303_v2, 0  ;;  %v60_v10 = vpop.f32.mrf.mxu0 }
  0x92   :  { %321 = vmatpush.bf16.msra.mxu0 %v309_v5  ;;  %334 = vmatpush.bf16.msra.mxu1 %v312_v4 }
  0x93   :  { %v73_v11 = vpop.f32.mrf.mxu1 }
  0x94   :  { %475 = vmatmul.msk.bf16.vlgmr.msrb.gmra.mxu2 %vm38_vm1, %v232_v3  ;;  %476 = vmatmul.msk.bf16.vlgmr.msrb.gmra.mxu3 %vm38_vm1, %v232_v3 }
  0x95   :  { %495 = vmatmul.msk.bf16.vlgmr.msra.gmra.mxu1 %vm38_vm1, %v477_v6 }
  0x96   :  { %494 = vmatmul.msk.bf16.vlgmr.msra.gmra.mxu0 %vm38_vm1, %v477_v6  ;;  %v206_v30 = vpop.permute.xlu0 %205 }
  0x97   :  { %v406_v59 = vpop.permute.xlu1 %405 }
  0x9e   :  { %v424_v15 = vpop.permute.xlu0 %423 }
  0x9f   :  { %v416_v8 = vpop.permute.xlu1 %415 }
  0xa4   :  { %497 = vmatmul.msk.bf16.vlgmr.msra.gmra.mxu2 %vm38_vm1, %v496_v7  ;;  %498 = vmatmul.msk.bf16.vlgmr.msra.gmra.mxu3 %vm38_vm1, %v496_v7 }
  0xea   :  { %v180_v12 = vpop.f32.mrf.mxu1 }
  0xeb   :  { %v199_v25 = vmul.f32 %v195_v20, %v180_v12 }
  0xf2   :  { %v182_v13 = vpop.f32.mrf.mxu1 }
 0x103   :  { %v167_v18 = vpop.f32.mrf.mxu0 }
 0x104   :  { %v198_v24 = vmul.f32 %v194_v19, %v167_v18 }
 0x107   :  { %v121_v26 = vpop.f32.mrf.mxu2  ;;  %v134_v27 = vpop.f32.mrf.mxu3 }
 0x108   :  { %v191_v28 = vadd.f32 %v189_v21, %v121_v26  ;;  %v192_v29 = vadd.f32 %v190_v22, %v134_v27 }
 0x10a   :  { %v200_v31 = vadd.f32 %v198_v24, %v191_v28  ;;  %v201_v32 = vadd.f32 %v199_v25, %v192_v29 }
 0x10b   :  { %v169_v33 = vpop.f32.mrf.mxu0 }
 0x10c   :  { %v208_v34 = vadd.f32 %v206_v30, %v200_v31  ;;  %v209_v35 = vadd.f32 %v206_v30, %v201_v32 }
 0x10e   :  { %v210_v36 = vmax.f32 %v208_v34, 0.0  ;;  %v211_v37 = vmax.f32 %v209_v35, 0.0 }
 0x10f   :  { %v123_v39 = vpop.f32.mrf.mxu2  ;;  %v136_v40 = vpop.f32.mrf.mxu3 }
 0x110   :  { %v218_v41 = vmul.f32 %v216_v23, %v210_v36  ;;  %v219_v42 = vmul.f32 %v216_v23, %v211_v37 }
 0x112   :  { %v226_v43 = vadd.f32 %v224_v38, %v218_v41  ;;  %v227_v44 = vadd.f32 %v224_v38, %v219_v42  ;;  %v336_v46 = vpop.f32.mrf.mxu1 }
 0x113   :  { %v323_v45 = vpop.f32.mrf.mxu0 }
 0x114   :  { %228 = vst [vmem:[%s704_s6] sm:$0xff] %v226_v43 }
 0x115   :  { %229 = vst [vmem:[%s704_s6 + $0x8] sm:$0xff] %v227_v44 }
 0x117   :  { %v262_v47 = vpop.f32.mrf.mxu2  ;;  %v275_v48 = vpop.f32.mrf.mxu3 }
 0x118   :  { %v389_v57 = vmul.f32 %v385_v54, %v262_v47  ;;  %v390_v58 = vmul.f32 %v386_v55, %v275_v48 }
 0x11a   :  { %v338_v50 = vpop.f32.mrf.mxu1  ;;  %v391_v0 = vadd.f32 %v389_v57, %v323_v45  ;;  %v392_v1 = vadd.f32 %v390_v58, %v336_v46 }
 0x11b   :  { %v325_v49 = vpop.f32.mrf.mxu0 }
 0x11f   :  { %v264_v52 = vpop.f32.mrf.mxu2  ;;  %v277_v53 = vpop.f32.mrf.mxu3 }
 0x127   :  { %v367_v62 = vpop.f32.mrf.mxu2  ;;  %v380_v63 = vpop.f32.mrf.mxu3 }
 0x128   :  { %v398_v2 = vmul.f32 %v394_v60, %v367_v62  ;;  %v399_v3 = vmul.f32 %v395_v61, %v380_v63 }
 0x12a   :  { %v400_v4 = vadd.f32 %v398_v2, %v391_v0  ;;  %v401_v5 = vadd.f32 %v399_v3, %v392_v1 }
 0x12c   :  { %v408_v6 = vadd.f32 %v406_v59, %v400_v4  ;;  %v409_v7 = vadd.f32 %v406_v59, %v401_v5 }
 0x12e   :  { %v410_v9 = vmax.f32 %v408_v6, 0.0  ;;  %v411_v10 = vmax.f32 %v409_v7, 0.0 }
 0x12f   :  { %v369_v11 = vpop.f32.mrf.mxu2  ;;  %v382_v12 = vpop.f32.mrf.mxu3 }
 0x130   :  { %v418_v13 = vmul.f32 %v416_v8, %v410_v9  ;;  %v419_v14 = vmul.f32 %v416_v8, %v411_v10 }
 0x132   :  { %v426_v16 = vadd.f32 %v424_v15, %v418_v13  ;;  %v427_v17 = vadd.f32 %v424_v15, %v419_v14 }
 0x134   :  { %499 = vst [vmem:[%s704_s6 + $0x10] sm:$0xff] %v426_v16 }
 0x135   :  { %500 = vst [vmem:[%s704_s6 + $0x18] sm:$0xff] %v427_v17 }

</bundles_post_ra>
